<compile_context>
chip_gen: v6e
topology: v6e:2x2x1
jax: 0.10.0
libtpu: 0.0.40
codegen_flags: <defaults>
</compile_context>

<pallas_src>
import functools

import jax
import jax.numpy as jnp
from jax import lax
from jax.experimental import pallas as pl
from jax.experimental.pallas import tpu as pltpu


def pam_kernel(x_ref, q_ref, k_ref, v_ref, gamma_ref, out_ref,
               m_scr, l_scr, acc_scr, *, hw_valid, mask_kv):
    ki = pl.program_id(2)

    @pl.when(ki == 0)
    def _init():
        m_scr[...] = jnp.full_like(m_scr, -jnp.inf)
        l_scr[...] = jnp.zeros_like(l_scr)
        acc_scr[...] = jnp.zeros_like(acc_scr)

    q = q_ref[0]                                   # (C8p, TQ)  compute dtype
    k = k_ref[0]                                   # (C8p, TK)
    v = v_ref[0]                                   # (C,   TK)

    # energy_t[m, n] = <k[:, m], q[:, n]>; torch's softmax axis (keys) maps to
    # sublanes here, so all stats come out lane-aligned with the accumulator.
    energy_t = lax.dot_general(
        k, q, (((0,), (0,)), ((), ())),
        preferred_element_type=jnp.float32)        # (TK, TQ) f32

    if mask_kv:
        # Only emitted when HW was padded up to a multiple of 128: padded key
        # positions must not receive attention mass.
        tk = energy_t.shape[0]
        kv_pos = ki * tk + lax.broadcasted_iota(jnp.int32, (tk, 1), 0)
        energy_t = jnp.where(kv_pos < hw_valid, energy_t, jnp.float32(-1e30))

    m_prev = m_scr[...]                                             # (1, TQ)
    m_new = jnp.maximum(m_prev, jnp.max(energy_t, axis=0, keepdims=True))
    p = jnp.exp(energy_t - m_new)                                   # (TK, TQ)
    m_scr[...] = m_new

    # Rescale of the running stats is a no-op on the first KV step (acc == 0,
    # l == 0), so skip it (also avoids alpha = exp(-inf)).  A data-dependent
    # guard (jnp.any(m_new > m_prev)) could skip further no-op rescales if the
    # bundle dump shows VALU saturation.
    @pl.when(ki > 0)
    def _rescale():
        alpha = jnp.exp(m_prev - m_new)                             # (1, TQ)
        acc_scr[...] = acc_scr[...] * alpha
        l_scr[...] = l_scr[...] * alpha

    l_scr[...] = l_scr[...] + jnp.sum(p, axis=0, keepdims=True)
    acc_scr[...] = acc_scr[...] + jnp.dot(
        v, p.astype(v.dtype), preferred_element_type=jnp.float32)   # (C, TQ)

    @pl.when(ki == pl.num_programs(2) - 1)
    def _finish():
        inv_l = pl.reciprocal(l_scr[...], approx=True)              # EUP slot
        gamma = gamma_ref[0, 0]
        out_ref[0] = (gamma * (acc_scr[...] * inv_l) + x_ref[0]).astype(out_ref.dtype)


def _pick_tile(hw_padded, target):
    """Largest multiple of 128 dividing hw_padded that is <= target."""
    assert hw_padded % 128 == 0
    t = max(128, min((target // 128) * 128, hw_padded))
    while hw_padded % t != 0:
        t -= 128
    return t


def pam_forward(x_nchw, wq, bq, wk, bk, wv, bv, gamma, *,
                block_q=256, block_k=512, compute_dtype=jnp.bfloat16,
                kv_buffers=2):
    """PAM forward.  x_nchw: (B, C, H, W); wq/wk: (C//8, C); wv: (C, C)."""
    B, C, H, W = x_nchw.shape
    HW = H * W
    C8 = wq.shape[0]
    C8p = ((C8 + 7) // 8) * 8                 # pad q/k channels to sublane mult
    HWp = ((HW + 127) // 128) * 128           # pad spatial to lane multiple
    pad_c = C8p - C8
    pad_hw = HWp - HW

    x = x_nchw.reshape(B, C, HW).astype(jnp.float32)

    # 1x1 convs == channel matmuls; done ONCE here (not per grid step) in f32,
    # then cast to the MXU compute dtype for the attention streams.
    q = jnp.einsum('oc,bcn->bon', wq, x) + bq[None, :, None]        # (B, C8, HW)
    k = jnp.einsum('oc,bcn->bon', wk, x) + bk[None, :, None]        # (B, C8, HW)
    v = jnp.einsum('oc,bcn->bon', wv, x) + bv[None, :, None]        # (B, C,  HW)

    q = jnp.pad(q, ((0, 0), (0, pad_c), (0, pad_hw))).astype(compute_dtype)
    k = jnp.pad(k, ((0, 0), (0, pad_c), (0, pad_hw))).astype(compute_dtype)
    v = jnp.pad(v, ((0, 0), (0, 0), (0, pad_hw))).astype(compute_dtype)
    x_p = jnp.pad(x, ((0, 0), (0, 0), (0, pad_hw)))                 # f32 residual
    gamma2 = jnp.asarray(gamma, jnp.float32).reshape(1, 1)

    tq = _pick_tile(HWp, block_q)
    tk = _pick_tile(HWp, block_k)
    nq = HWp // tq
    nk = HWp // tk
    # Note: on v7x (2 TCs/chip) keep B*nq >= 2 so the parallel axes load both
    # cores; with B >= 2 (or HW >= 2*block_q) this holds automatically.
    grid = (B, nq, nk)

    bpe = jnp.dtype(compute_dtype).itemsize
    tile_bytes = (C * tq * 4            # x residual tile (f32)
                  + C8p * tq * bpe      # q tile
                  + C8p * tk * bpe      # k tile
                  + C * tk * bpe        # v tile
                  + C * tq * 4)         # out tile (f32)
    scratch_bytes = (C * tq + 2 * tq) * 4
    ws = 2 * tile_bytes + scratch_bytes           # double-buffered pipeline
    vmem_limit = max(2 * ws + (2 << 20), 16 << 20)
    # Stay under ~40 MiB for v7x (64 MiB/TC) unless the working set needs more.
    vmem_limit = int(min(vmem_limit, max(40 << 20, ws + (4 << 20))))

    flops = int(2 * B * HWp * HWp * (C8p + C))
    transcendentals = int(B * HWp * HWp + B * nk * HWp)
    bytes_accessed = int(B * (C * HWp * 4
                              + C8p * HWp * bpe
                              + nq * (C8p + C) * HWp * bpe
                              + C * HWp * 4))
    cost = pl.CostEstimate(flops=flops, transcendentals=transcendentals,
                           bytes_accessed=bytes_accessed)

    # Optional deeper KV pipelining (e.g. Buffered(3) on bandwidth-limited v5e
    # if xprof shows exposed DMA on the repeated K/V stream).
    kv_kw = {} if kv_buffers == 2 else {"pipeline_mode": pl.Buffered(kv_buffers)}

    kernel = functools.partial(pam_kernel, hw_valid=HW, mask_kv=(pad_hw > 0))

    out = pl.pallas_call(
        kernel,
        out_shape=jax.ShapeDtypeStruct((B, C, HWp), jnp.float32),
        grid_spec=pltpu.PrefetchScalarGridSpec(
            num_scalar_prefetch=0,
            grid=grid,
            in_specs=[
                pl.BlockSpec((1, C, tq), lambda b, qi, ki: (b, 0, qi)),    # x residual
                pl.BlockSpec((1, C8p, tq), lambda b, qi, ki: (b, 0, qi)),  # Q tile
                pl.BlockSpec((1, C8p, tk), lambda b, qi, ki: (b, 0, ki), **kv_kw),  # K tile
                pl.BlockSpec((1, C, tk), lambda b, qi, ki: (b, 0, ki), **kv_kw),    # V tile
                pl.BlockSpec(memory_space=pltpu.MemorySpace.SMEM),         # gamma
            ],
            out_specs=pl.BlockSpec((1, C, tq), lambda b, qi, ki: (b, 0, qi)),
            scratch_shapes=[
                pltpu.VMEM((1, tq), jnp.float32),   # running max
                pltpu.VMEM((1, tq), jnp.float32),   # running sum
                pltpu.VMEM((C, tq), jnp.float32),   # output accumulator
            ],
        ),
        compiler_params=pltpu.CompilerParams(
            dimension_semantics=("parallel", "parallel", "arbitrary"),
            vmem_limit_bytes=vmem_limit),
        cost_estimate=cost,
    )(x_p, q, k, v, gamma2)

    return out[:, :, :HW].reshape(B, C, H, W)


def _reference(x_nchw, wq, bq, wk, bk, wv, bv, gamma):
    """Plain-JAX replica of the PyTorch forward for validation."""
    B, C, H, W = x_nchw.shape
    HW = H * W
    x_flat = x_nchw.reshape(B, C, HW)
    q = jnp.einsum('oc,bcn->bon', wq, x_flat) + bq[None, :, None]
    k = jnp.einsum('oc,bcn->bon', wk, x_flat) + bk[None, :, None]
    v = jnp.einsum('oc,bcn->bon', wv, x_flat) + bv[None, :, None]
    energy = jnp.einsum('bcn,bcm->bnm', q, k)                       # (B, HW, HW)
    attn = jax.nn.softmax(energy, axis=-1)
    out = jnp.einsum('bcm,bnm->bcn', v, attn).reshape(B, C, H, W)
    return gamma * out + x_nchw


if __name__ == "__main__":
    B, C, H, W = 2, 16, 16, 16          # in_dim=16 -> C//8 = 2, HW = 256
    C8 = C // 8

    key = jax.random.PRNGKey(0)
    kx, k1, k2, k3, k4, k5, k6, kx2 = jax.random.split(key, 8)

    x = jax.random.normal(kx, (B, C, H, W), dtype=jnp.float32)
    wq = jax.random.normal(k1, (C8, C), dtype=jnp.float32) * 0.1
    bq = jax.random.normal(k2, (C8,), dtype=jnp.float32) * 0.1
    wk = jax.random.normal(k3, (C8, C), dtype=jnp.float32) * 0.1
    bk = jax.random.normal(k4, (C8,), dtype=jnp.float32) * 0.1
    wv = jax.random.normal(k5, (C, C), dtype=jnp.float32) * 0.1
    bv = jax.random.normal(k6, (C,), dtype=jnp.float32) * 0.1

    # 1) gamma initializes to 0 in the torch module -> output must equal x.
    gamma0 = jnp.zeros((), jnp.float32)
    out0 = jax.block_until_ready(
        pam_forward(x, wq, bq, wk, bk, wv, bv, gamma0,
                    block_q=128, block_k=128, compute_dtype=jnp.float32))
    ref0 = _reference(x, wq, bq, wk, bk, wv, bv, gamma0)
    assert out0.shape == (B, C, H, W)
    assert jnp.allclose(out0, ref0, atol=1e-5, rtol=1e-5), "mismatch (gamma=0)"

    # 2) Nonzero gamma, f32 path, 2 query tiles x 2 KV tiles -> exercises the
    #    online-softmax accumulation/rescale across KV steps.
    g = jnp.float32(0.7)
    ref1 = _reference(x, wq, bq, wk, bk, wv, bv, g)
    out1 = jax.block_until_ready(
        pam_forward(x, wq, bq, wk, bk, wv, bv, g,
                    block_q=128, block_k=128, compute_dtype=jnp.float32))
    assert jnp.allclose(out1, ref1, atol=2e-2, rtol=2e-2), "mismatch (f32 tiled)"

    # 3) bf16 attention streams with default tile targets.
    out2 = jax.block_until_ready(pam_forward(x, wq, bq, wk, bk, wv, bv, g))
    assert jnp.allclose(out2, ref1, atol=6e-2, rtol=6e-2), "mismatch (bf16)"

    # 4) Non-128-multiple spatial size -> exercises HW padding + KV masking.
    Hs = Ws = 12                         # HW = 144, padded to 256
    xs = jax.random.normal(kx2, (B, C, Hs, Ws), dtype=jnp.float32)
    ref3 = _reference(xs, wq, bq, wk, bk, wv, bv, g)
    out3 = jax.block_until_ready(
        pam_forward(xs, wq, bq, wk, bk, wv, bv, g,
                    block_q=128, block_k=128, compute_dtype=jnp.float32))
    assert out3.shape == (B, C, Hs, Ws)
    assert jnp.allclose(out3, ref3, atol=2e-2, rtol=2e-2), "mismatch (padded HW)"

    print("KERNEL_OK")
</pallas_src>

<mosaic_0001>
module attributes {stable_mosaic.version = 11 : i64} {
  func.func @pam_kernel(%arg0: i32, %arg1: i32, %arg2: i32, %arg3: memref<1x16x128xf32, #tpu.memory_space<vmem>>, %arg4: memref<1x8x128xf32, #tpu.memory_space<vmem>>, %arg5: memref<1x8x128xf32, #tpu.memory_space<vmem>>, %arg6: memref<1x16x128xf32, #tpu.memory_space<vmem>>, %arg7: memref<1x1xf32, #tpu.memory_space<smem>>, %arg8: memref<1x16x128xf32, #tpu.memory_space<vmem>>, %arg9: memref<1x128xf32, #tpu.memory_space<vmem>>, %arg10: memref<1x128xf32, #tpu.memory_space<vmem>>, %arg11: memref<16x128xf32, #tpu.memory_space<vmem>>) attributes {dimension_semantics = [#tpu.dimension_semantics<parallel>, #tpu.dimension_semantics<parallel>, #tpu.dimension_semantics<arbitrary>], iteration_bounds = array<i64: 2, 2, 2>, scalar_prefetch = 0 : i64, scratch_operands = 3 : i64, tpu.core_type = #tpu.core_type<tc>, window_params = [{transform_indices = @transform_0, window_bounds = array<i64: 1, 16, 128>}, {transform_indices = @transform_1, window_bounds = array<i64: 1, 8, 128>}, {transform_indices = @transform_2, window_bounds = array<i64: 1, 8, 128>}, {transform_indices = @transform_3, window_bounds = array<i64: 1, 16, 128>}, {transform_indices = @transform_4, window_bounds = array<i64: 1, 1>}, {transform_indices = @transform_5, window_bounds = array<i64: 1, 16, 128>}]} {
    %c0_i32 = arith.constant 0 : i32
    %0 = arith.cmpi eq, %arg2, %c0_i32 : i32
    %1 = arith.extui %0 : i1 to i32
    %c0_i32_0 = arith.constant 0 : i32
    %2 = arith.cmpi ne, %1, %c0_i32_0 : i32
    scf.if %2 {
      %cst_27 = arith.constant 0xFF800000 : f32
      %33 = vector.broadcast %cst_27 : f32 to vector<1x128xf32>
      %c0_28 = arith.constant 0 : index
      %c0_29 = arith.constant 0 : index
      %34 = vector.load %arg9[%c0_28, %c0_29] : memref<1x128xf32, #tpu.memory_space<vmem>>, vector<1x128xf32>
      tpu.vector_store %arg9[%c0_28, %c0_29], %33 {strides = array<i32>} : memref<1x128xf32, #tpu.memory_space<vmem>>, vector<1x128xf32>,
      %cst_30 = arith.constant 0.000000e+00 : f32
      %35 = vector.broadcast %cst_30 : f32 to vector<1x128xf32>
      %c0_31 = arith.constant 0 : index
      %c0_32 = arith.constant 0 : index
      %36 = vector.load %arg10[%c0_31, %c0_32] : memref<1x128xf32, #tpu.memory_space<vmem>>, vector<1x128xf32>
      tpu.vector_store %arg10[%c0_31, %c0_32], %35 {strides = array<i32>} : memref<1x128xf32, #tpu.memory_space<vmem>>, vector<1x128xf32>,
      %cst_33 = arith.constant 0.000000e+00 : f32
      %37 = vector.broadcast %cst_33 : f32 to vector<16x128xf32>
      %c0_34 = arith.constant 0 : index
      %c0_35 = arith.constant 0 : index
      %38 = vector.load %arg11[%c0_34, %c0_35] : memref<16x128xf32, #tpu.memory_space<vmem>>, vector<16x128xf32>
      tpu.vector_store %arg11[%c0_34, %c0_35], %37 {strides = array<i32>} : memref<16x128xf32, #tpu.memory_space<vmem>>, vector<16x128xf32>,
    } else {
    }
    %c0 = arith.constant 0 : index
    %c0_1 = arith.constant 0 : index
    %c0_2 = arith.constant 0 : index
    %3 = vector.load %arg4[%c0, %c0_1, %c0_2] : memref<1x8x128xf32, #tpu.memory_space<vmem>>, vector<1x8x128xf32>
    %4 = vector.shape_cast %3 : vector<1x8x128xf32> to vector<8x128xf32>
    %c0_3 = arith.constant 0 : index
    %c0_4 = arith.constant 0 : index
    %c0_5 = arith.constant 0 : index
    %5 = vector.load %arg5[%c0_3, %c0_4, %c0_5] : memref<1x8x128xf32, #tpu.memory_space<vmem>>, vector<1x8x128xf32>
    %6 = vector.shape_cast %5 : vector<1x8x128xf32> to vector<8x128xf32>
    %c0_6 = arith.constant 0 : index
    %c0_7 = arith.constant 0 : index
    %c0_8 = arith.constant 0 : index
    %7 = vector.load %arg6[%c0_6, %c0_7, %c0_8] : memref<1x16x128xf32, #tpu.memory_space<vmem>>, vector<1x16x128xf32>
    %8 = vector.shape_cast %7 : vector<1x16x128xf32> to vector<16x128xf32>
    %cst = arith.constant dense<0.000000e+00> : vector<128x128xf32>
    %9 = tpu.matmul %6, %4, %cst {dimension_numbers = #tpu.dot_dimension_numbers<[0], [0], [1], [1], [0, 1, 1, 1], [], []>} : vector<8x128xf32>, vector<8x128xf32>, vector<128x128xf32> -> vector<128x128xf32>
    %c0_9 = arith.constant 0 : index
    %c0_10 = arith.constant 0 : index
    %10 = vector.load %arg9[%c0_9, %c0_10] : memref<1x128xf32, #tpu.memory_space<vmem>>, vector<1x128xf32>
    %cst_11 = arith.constant dense<0xFF800000> : vector<128xf32>
    %11 = vector.multi_reduction <maximumf>, %9, %cst_11 [0] : vector<128x128xf32> to vector<128xf32>
    %12 = vector.shape_cast %11 : vector<128xf32> to vector<1x128xf32>
    %13 = arith.maximumf %10, %12 : vector<1x128xf32>
    %14 = vector.broadcast %13 : vector<1x128xf32> to vector<128x128xf32>
    %15 = arith.subf %9, %14 : vector<128x128xf32>
    %16 = math.exp %15 : vector<128x128xf32>
    %c0_12 = arith.constant 0 : index
    %c0_13 = arith.constant 0 : index
    %17 = vector.load %arg9[%c0_12, %c0_13] : memref<1x128xf32, #tpu.memory_space<vmem>>, vector<1x128xf32>
    tpu.vector_store %arg9[%c0_12, %c0_13], %13 {strides = array<i32>} : memref<1x128xf32, #tpu.memory_space<vmem>>, vector<1x128xf32>,
    %c0_i32_14 = arith.constant 0 : i32
    %18 = arith.cmpi sgt, %arg2, %c0_i32_14 : i32
    %19 = arith.extui %18 : i1 to i32
    %c0_i32_15 = arith.constant 0 : i32
    %20 = arith.cmpi ne, %19, %c0_i32_15 : i32
    scf.if %20 {
      %33 = arith.subf %10, %13 : vector<1x128xf32>
      %34 = math.exp %33 : vector<1x128xf32>
      %c0_27 = arith.constant 0 : index
      %c0_28 = arith.constant 0 : index
      %35 = vector.load %arg11[%c0_27, %c0_28] : memref<16x128xf32, #tpu.memory_space<vmem>>, vector<16x128xf32>
      %36 = vector.broadcast %34 : vector<1x128xf32> to vector<16x128xf32>
      %37 = arith.mulf %35, %36 : vector<16x128xf32>
      %c0_29 = arith.constant 0 : index
      %c0_30 = arith.constant 0 : index
      %38 = vector.load %arg11[%c0_29, %c0_30] : memref<16x128xf32, #tpu.memory_space<vmem>>, vector<16x128xf32>
      tpu.vector_store %arg11[%c0_29, %c0_30], %37 {strides = array<i32>} : memref<16x128xf32, #tpu.memory_space<vmem>>, vector<16x128xf32>,
      %c0_31 = arith.constant 0 : index
      %c0_32 = arith.constant 0 : index
      %39 = vector.load %arg10[%c0_31, %c0_32] : memref<1x128xf32, #tpu.memory_space<vmem>>, vector<1x128xf32>
      %40 = arith.mulf %39, %34 : vector<1x128xf32>
      %c0_33 = arith.constant 0 : index
      %c0_34 = arith.constant 0 : index
      %41 = vector.load %arg10[%c0_33, %c0_34] : memref<1x128xf32, #tpu.memory_space<vmem>>, vector<1x128xf32>
      tpu.vector_store %arg10[%c0_33, %c0_34], %40 {strides = array<i32>} : memref<1x128xf32, #tpu.memory_space<vmem>>, vector<1x128xf32>,
    } else {
    }
    %c0_16 = arith.constant 0 : index
    %c0_17 = arith.constant 0 : index
    %21 = vector.load %arg10[%c0_16, %c0_17] : memref<1x128xf32, #tpu.memory_space<vmem>>, vector<1x128xf32>
    %cst_18 = arith.constant dense<0.000000e+00> : vector<128xf32>
    %22 = vector.multi_reduction <add>, %16, %cst_18 [0] : vector<128x128xf32> to vector<128xf32>
    %23 = vector.shape_cast %22 : vector<128xf32> to vector<1x128xf32>
    %24 = arith.addf %21, %23 : vector<1x128xf32>
    %c0_19 = arith.constant 0 : index
    %c0_20 = arith.constant 0 : index
    %25 = vector.load %arg10[%c0_19, %c0_20] : memref<1x128xf32, #tpu.memory_space<vmem>>, vector<1x128xf32>
    tpu.vector_store %arg10[%c0_19, %c0_20], %24 {strides = array<i32>} : memref<1x128xf32, #tpu.memory_space<vmem>>, vector<1x128xf32>,
    %c0_21 = arith.constant 0 : index
    %c0_22 = arith.constant 0 : index
    %26 = vector.load %arg11[%c0_21, %c0_22] : memref<16x128xf32, #tpu.memory_space<vmem>>, vector<16x128xf32>
    %cst_23 = arith.constant dense<0.000000e+00> : vector<16x128xf32>
    %27 = tpu.matmul %8, %16, %cst_23 {dimension_numbers = #tpu.dot_dimension_numbers<[1], [0], [0], [1], [0, 0, 1, 1], [], []>} : vector<16x128xf32>, vector<128x128xf32>, vector<16x128xf32> -> vector<16x128xf32>
    %28 = arith.addf %26, %27 : vector<16x128xf32>
    %c0_24 = arith.constant 0 : index
    %c0_25 = arith.constant 0 : index
    %29 = vector.load %arg11[%c0_24, %c0_25] : memref<16x128xf32, #tpu.memory_space<vmem>>, vector<16x128xf32>
    tpu.vector_store %arg11[%c0_24, %c0_25], %28 {strides = array<i32>} : memref<16x128xf32, #tpu.memory_space<vmem>>, vector<16x128xf32>,
    %c1_i32 = arith.constant 1 : i32
    %30 = arith.cmpi eq, %arg2, %c1_i32 : i32
    %31 = arith.extui %30 : i1 to i32
    %c0_i32_26 = arith.constant 0 : i32
    %32 = arith.cmpi ne, %31, %c0_i32_26 : i32
    scf.if %32 {
      %c0_27 = arith.constant 0 : index
      %c0_28 = arith.constant 0 : index
      %33 = vector.load %arg10[%c0_27, %c0_28] : memref<1x128xf32, #tpu.memory_space<vmem>>, vector<1x128xf32>
      %34 = tpu.reciprocal %33 {approx = true} : vector<1x128xf32> -> vector<1x128xf32>
      %c0_29 = arith.constant 0 : index
      %c0_30 = arith.constant 0 : index
      %35 = memref.load %arg7[%c0_29, %c0_30] : memref<1x1xf32, #tpu.memory_space<smem>>
      %c0_31 = arith.constant 0 : index
      %c0_32 = arith.constant 0 : index
      %36 = vector.load %arg11[%c0_31, %c0_32] : memref<16x128xf32, #tpu.memory_space<vmem>>, vector<16x128xf32>
      %37 = vector.broadcast %34 : vector<1x128xf32> to vector<16x128xf32>
      %38 = arith.mulf %36, %37 : vector<16x128xf32>
      %39 = vector.broadcast %35 : f32 to vector<16x128xf32>
      %40 = arith.mulf %39, %38 : vector<16x128xf32>
      %c0_33 = arith.constant 0 : index
      %c0_34 = arith.constant 0 : index
      %c0_35 = arith.constant 0 : index
      %41 = vector.load %arg3[%c0_33, %c0_34, %c0_35] : memref<1x16x128xf32, #tpu.memory_space<vmem>>, vector<1x16x128xf32>
      %42 = vector.shape_cast %41 : vector<1x16x128xf32> to vector<16x128xf32>
      %43 = arith.addf %40, %42 : vector<16x128xf32>
      %c0_36 = arith.constant 0 : index
      %c0_37 = arith.constant 0 : index
      %c0_38 = arith.constant 0 : index
      %44 = vector.load %arg8[%c0_36, %c0_37, %c0_38] : memref<1x16x128xf32, #tpu.memory_space<vmem>>, vector<1x16x128xf32>
      %45 = vector.shape_cast %44 : vector<1x16x128xf32> to vector<16x128xf32>
      %46 = vector.shape_cast %43 : vector<16x128xf32> to vector<1x16x128xf32>
      tpu.vector_store %arg8[%c0_36, %c0_37, %c0_38], %46 {strides = array<i32>} : memref<1x16x128xf32, #tpu.memory_space<vmem>>, vector<1x16x128xf32>,
    } else {
    }
    return
  }
  func.func @transform_0(%arg0: i32, %arg1: i32, %arg2: i32) -> (i32, i32, i32) {
    %c0_i32 = arith.constant 0 : i32
    %c0_i32_0 = arith.constant 0 : i32
    return %arg0, %c0_i32, %arg1 : i32, i32, i32
  }
  func.func @transform_1(%arg0: i32, %arg1: i32, %arg2: i32) -> (i32, i32, i32) {
    %c0_i32 = arith.constant 0 : i32
    %c0_i32_0 = arith.constant 0 : i32
    return %arg0, %c0_i32, %arg1 : i32, i32, i32
  }
  func.func @transform_2(%arg0: i32, %arg1: i32, %arg2: i32) -> (i32, i32, i32) {
    %c0_i32 = arith.constant 0 : i32
    %c0_i32_0 = arith.constant 0 : i32
    return %arg0, %c0_i32, %arg2 : i32, i32, i32
  }
  func.func @transform_3(%arg0: i32, %arg1: i32, %arg2: i32) -> (i32, i32, i32) {
    %c0_i32 = arith.constant 0 : i32
    %c0_i32_0 = arith.constant 0 : i32
    return %arg0, %c0_i32, %arg2 : i32, i32, i32
  }
  func.func @transform_4(%arg0: i32, %arg1: i32, %arg2: i32) -> (i32, i32) {
    %c0_i32 = arith.constant 0 : i32
    %c0_i32_0 = arith.constant 0 : i32
    %c0_i32_1 = arith.constant 0 : i32
    return %c0_i32, %c0_i32_0 : i32, i32
  }
  func.func @transform_5(%arg0: i32, %arg1: i32, %arg2: i32) -> (i32, i32, i32) {
    %c0_i32 = arith.constant 0 : i32
    %c0_i32_0 = arith.constant 0 : i32
    return %arg0, %c0_i32, %arg1 : i32, i32, i32
  }
}

</mosaic_0001>

<bundles_post_ra>
// kernel: tpu_custom_call.1
= control target key start
LH: loop header
LB: loop body
LE: loop exit
PB: predicated region body
PF: predicated region fallthrough
CT: control target
= control target key end

     0   :  { %s2126_s0 = inlined_call_operand.hbm [shape: f32[2,16,256], index: 0, kind: input, shape index: {}]   ;;  %s2127_s1 = inlined_call_operand.hbm [shape: f32[2,8,256], index: 1, kind: input, shape index: {}]   ;;  %s2128_s2 = inlined_call_operand.hbm [shape: f32[2,8,256], index: 2, kind: input, shape index: {}]   ;;  %s2129_s3 = inlined_call_operand.hbm [shape: f32[2,16,256], index: 3, kind: input, shape index: {}]   ;;  %s2130_s4 = inlined_call_operand.<no memory space> [shape: f32[1,1], index: 4, kind: input, shape index: {}]   ;;  %s2131_s5 = inlined_call_operand.hbm [shape: f32[2,16,256], index: 5, kind: output, shape index: {}]  }
   0x1   :  { %2147 = sst [smem:[#allocation33_spill]] %s2126_s0 }
   0x2   :  { %2148 = sst [smem:[#allocation34_spill]] %s2127_s1 }
   0x3   :  { %2149 = sst [smem:[#allocation35_spill]] %s2131_s5 }
   0x4   :  { %10 = sst [smem:[#allocation5]] %s2130_s4 }
   0x5   :  { %11 = vsyncpa [#allocation7], 0 }
   0x6   :  { %13 = vsyncpa [#allocation7 + $0x1], 0 }
   0x7   :  { %14 = vsyncpa [#allocation10], 0 }
   0x8   :  { %16 = vsyncpa [#allocation10 + $0x1], 0 }
   0x9   :  { %17 = vsyncpa [#allocation13], 0 }
   0xa   :  { %19 = vsyncpa [#allocation13 + $0x1], 0 }
   0xb   :  { %20 = vsyncpa [#allocation8], 0 }
   0xc   :  { %22 = vsyncpa [#allocation8 + $0x1], 0  ;;  %s1668_s20 = smov 0   ;;  %s1670_s21 = smov 0  }
   0xd   :  { %s1672_s22 = smov 0   ;;  %s1674_s23 = smov 0  }
   0xe   :  { %s1676_s24 = smov 0   ;;  %s1678_s25 = smov 0  }
   0xf   :  { %s1680_s4 = smov 0   ;;  %s1682_s26 = smov 0  }
  0x10   :  { %s1684_s27 = smov 0   ;;  %s1686_s28 = smov 0  }
  0x11   :  { %s1688_s29 = smov 0   ;;  %s1690_s30 = smov 0  }
  0x12   :  { %s1692_s6 = smov 0  }
  0x13 LB: > { %2150 = sst [smem:[#allocation20_spill]] %s1584_s23  ;;  %s1734_s7 = sadd.s32 4294967295, %s1620_s6   ;;  %s1620_s6 = sphi %s1692_s6, %s28_s6   ;;  %s1616_s30 = sphi %s1690_s30, %s2208_s30   ;;  %s1612_s29 = sphi %s1688_s29, %s2207_s29   ;;  %s1608_s28 = sphi %s1686_s28, %s2206_s28   ;;  %s1604_s27 = sphi %s1684_s27, %s2205_s27   ;;  %s1600_s26 = sphi %s1682_s26, %s2204_s26   ;;  %s1596_s4 = sphi %s1680_s4, %s2203_s4   ;;  %s1592_s25 = sphi %s1678_s25, %s2194_s25   ;;  %s1588_s24 = sphi %s1676_s24, %s2202_s24   ;;  %s1584_s23 = sphi %s1674_s23, %s2201_s23   ;;  %s1580_s22 = sphi %s1672_s22, %s2200_s22   ;;  %s1576_s21 = sphi %s1670_s21, %s2199_s21   ;;  %s1572_s20 = sphi %s1668_s20, %s2198_s20  }
  0x14   : > { %2151 = sst [smem:[#allocation21_spill]] %s1592_s25  ;;  %s40_s9 = sadd.s32 1, %s1608_s28 }
  0x15   : > { %2152 = sst [smem:[#allocation22_spill]] %s1596_s4  ;;  %s43_s10 = sadd.s32 1, %s1612_s29 }
  0x16   : > { %2153 = sst [smem:[#allocation23_spill]] %s1600_s26  ;;  %p41_p0 = scmp.ge.s32.totalorder %s40_s9, 2 }
  0x17   : > { %2154 = sst [smem:[#allocation24_spill]] %s1604_s27  ;;  %s47_s11 = sadd.s32 1, %s1616_s30 }
  0x18   : > { %p63_p1 = scmp.ne.s32.totalorder %s1592_s25, %s1588_s24  ;;  %s2210_s9 = smov (%p41_p0, %s40_s9), 0 }
  0x19   : > { %2155 = sst [smem:[#allocation25_spill]] %s2210_s9  ;;  %s2212_s10 = smov (!%p41_p0, %s43_s10), %s1612_s29 }
  0x1a   : > { %p64_p2 = scmp.eq.s32.totalorder %s1620_s6, 0  ;;  %p69_p3 = scmp.ne.s32.totalorder %s1588_s24, %s1584_s23 }
  0x1b   : > { %p45_p4 = scmp.ge.s32.totalorder %s2212_s10, 2  ;;  %p70_p5 = scmp.eq.s32.totalorder %s1734_s7, 0 }
  0x1c   : > { %p1755_p6 = por %p64_p2, %p63_p1  ;;  %s108_s14 = ssub.s32 %s1608_s28, %s2210_s9 }
  0x1d   : > { %s2214_s10 = smov (%p45_p4, %s2212_s10), 0  ;;  %s2216_s11 = smov (!%p45_p4, %s47_s11), %s1616_s30 }
  0x1e   : > { %2157 = sst [smem:[#allocation26_spill]] %s2214_s10  ;;  %s52_s15 = ssub.s32 %s1612_s29, %s2214_s10 }
  0x1f   : > { %p1771_p7 = por %p70_p5, %p69_p3  ;;  %p49_p8 = scmp.ge.s32.totalorder %s2216_s11, 2 }
  0x20   : > { %s112_s17 = sadd.s32 1, %s1580_s22  ;;  %p119_p9 = scmp.ne.s32.totalorder %s1580_s22, %s1576_s21 }
  0x21   : > { %p125_p10 = scmp.ne.s32.totalorder %s1576_s21, %s1572_s20  ;;  %s2218_s11 = smov (%p49_p8, %s2216_s11), 0 }
  0x22   : > { %2159 = sst [smem:[#allocation27_spill]] %s2218_s11  ;;  %p1784_p11 = por %p119_p9, %p64_p2 }
  0x23   : > { %p1790_p12 = por %p125_p10, %p70_p5  ;;  %s51_s12 = ssub.s32 %s1616_s30, %s2218_s11 }
  0x24   : > { %p200_p13 = scmp.eq.s32.totalorder %s1734_s7, 7  ;;  %s53_s20 = sor.u32 %s52_s15, %s51_s12 }
  0x25   : > { %s2161_s19 = scalar_select %p1790_p12, 1, 0 }
  0x26   : > { %s109_s8 = sor.u32 %s108_s14, %s51_s12  ;;  %p54_p0 = scmp.eq.s32.totalorder %s53_s20, 0 }
  0x27   : > { %2162 = sst [smem:[#allocation28_spill]] %s2161_s19  ;;  %p110_p4 = scmp.eq.s32.totalorder %s109_s8, 0 }
  0x28   : > { %p1800_p2 = por %p200_p13, %p63_p1  ;;  %s2165_s9 = sadd.s32 4294967294, %s1620_s6  }
  0x29   : > { %p206_p8 = scmp.eq.s32.totalorder %s2165_s9, 7  ;;  %s2166_s5 = sadd.s32 1, %s1592_s25 }
  0x2a   : > { %s2163_s10 = scalar_select %p1800_p2, 1, 0 }
  0x2b   : > { %s1809_s26 = scalar_select %p54_p0, %s1592_s25, %s2166_s5  }
  0x2c   : > { %2164 = sst [smem:[#allocation29_spill]] %s2163_s10  ;;  %p1817_p5 = por %p206_p8, %p69_p3 }
  0x2d   : > { %2167 = sst [smem:[#allocation30_spill]] %s1809_s26  ;;  %p2143_p9 = scmp.lt.s32.totalorder %s1620_s6, 8 }
  0x2e   : > { %s1812_s27 = scalar_select %p110_p4, %s1580_s22, %s112_s17  }
  0x2f   : > { %s2169_s15 = scalar_select %p1817_p5, 1, 0 }
  0x30   : > { %2168 = sst [smem:[#allocation31_spill]] %s1812_s27  ;;  %s1823_s8 = sand.u32 1, %s1592_s25  }
  0x31   : > { %2170 = sst [smem:[#allocation32_spill]] %s2169_s15  ;;  %s1044_s12 = sshll.u32 %s1823_s8, 4 }
  0x32   : > { %p1830_p1 = pnand %p2143_p9, %p1755_p6  ;;  %s233_s5 = scalar_lea.vmem [#allocation6], %s1044_s12 }
  0x33   : > { %s241_s14 = sshll.u32 %s233_s5, 4  ;;  %s251_s17 = sand.u32 1, %s1620_s6   ;;  %s1835_s14 = int_to_ptr.vmem [resolvable:$true] %s241_s14 }
  0x34   : > { %s1047_s20 = sshll.u32 %s1823_s8, 3  ;;  %s1048_s11 = sshll.u32 %s1616_s30, 1 }
  0x35   : > { %s260_s26 = sadd.s32 %s1612_s29, %s1048_s11  ;;  %s255_s25 = scalar_lea.vmem [#allocation9], %s1047_s20 }
  0x36   : > { %s264_s27 = sshll.u32 %s255_s25, 4  ;;  %s1049_s15 = sshll.u32 %s260_s26, 7  ;;  %s265_s27 = int_to_ptr.vmem [resolvable:$true] %s264_s27 }
  0x37   : > { %s2172_s1 = sld [smem:[#allocation34_spill]]  ;;  %s1844_s4 = sadd.s32 %s1608_s28, %s1048_s11 }
  0x38   : > { %s1846_s19 = scalar_lea.sflag [#allocation10], %s251_s17  ;;  %p1362_p3 = pneg %p1830_p1 }
  0x39   : > { %s1373_s12 = scalar_lea.vmem %s265_s27, 128  ;;  %s1622_s5 = smov [#allocation9]  }
  0x3a   : > { %p1374_p6 = scmp.ne.s32.totalorder %s265_s27, %s1373_s12  ;;  %s1378_s25 = sshll.u32 %s1622_s5, 4  ;;  %s1379_s25 = int_to_ptr.vmem [resolvable:$false] %s1378_s25 }
  0x3b   : > { %s1380_s26 = scalar_lea.vmem %s1379_s25, 256  ;;  %p1381_p0 = scmp.lt.s32.totalorder %s265_s27, %s1379_s25 }
  0x3c   : > { %p1376_p10 = pnand %p1374_p6, %p1362_p3  ;;  %p1382_p4 = scmp.lt.s32.totalorder %s1380_s26, %s1373_s12 }
  0x3d   : > { %s262_s10 = scalar_lea.hbm %s2172_s1, %s1049_s15 }
  0x3e   : > { %p1377_p13 = pneg %p1376_p10  ;;  %p1383_p8 = por %p1382_p4, %p1381_p0 }
  0x40   : > { %p1384_p9 = pnand %p1383_p8, %p1377_p13 }
  0x42   : > { %1387 = shalt.err (!%p1384_p9)
}
  0x43   : > { %1198 = dma.hbm_to_vmem [thread:$0]  (!%p1830_p1), %s262_s10, 128, %s265_s27, %s1846_s19  }
  0x44   : > { %p2173_p6 = scmp.lt.s32.totalorder %s1620_s6, 8  ;;  %p1056_p9 = scmp.ge.s32.totalorder %s1620_s6, 1 }
  0x45   : > { %p311_p13 = scmp.lt.s32.totalorder %s1620_s6, 9  ;;  %s2144_s15 = sshll.u32 %s1616_s30, 2 }
  0x46   : > { %p1860_p10 = pnand %p2173_p6, %p1784_p11  ;;  %s238_s17 = sadd.s32 %s1612_s29, %s2144_s15 }
  0x47   : > { %p1866_p0 = pnand %p1056_p9, %p311_p13  ;;  %s1046_s20 = sshll.u32 %s238_s17, 7 }
  0x48   : > { %s2176_s0 = sld [smem:[#allocation33_spill]]  ;;  %s230_s10 = scalar_lea.sflag [#allocation7], %s1823_s8 }
  0x49   : > { %s1401_s18 = scalar_lea.vmem %s1835_s14, 256  ;;  %s1623_s5 = smov [#allocation6]  }
  0x4a   : > { %p1402_p11 = scmp.ne.s32.totalorder %s1835_s14, %s1401_s18  ;;  %s1406_s25 = sshll.u32 %s1623_s5, 4  ;;  %s1407_s25 = int_to_ptr.vmem [resolvable:$false] %s1406_s25 }
  0x4b   : > { %s1408_s26 = scalar_lea.vmem %s1407_s25, 512  ;;  %p1409_p6 = scmp.lt.s32.totalorder %s1835_s14, %s1407_s25 }
  0x4c   : > { %p1404_p4 = pnand %p1402_p11, %p1362_p3  ;;  %p1410_p9 = scmp.lt.s32.totalorder %s1408_s26, %s1401_s18 }
  0x4e   : > { %s240_s27 = scalar_lea.hbm %s2176_s0, %s1046_s20  ;;  %p1405_p8 = pneg %p1404_p4 }
  0x4f   : > { %p1411_p13 = por %p1410_p9, %p1409_p6 }
  0x51   : > { %p1412_p5 = pnand %p1411_p13, %p1405_p8 }
  0x53   : > { %1415 = shalt.err (!%p1412_p5)
}
  0x54   : > { %s2145_s17 = smov 256   ;;  %s2146_s8 = smov 128  }
  0x55   : > { %s1626_s20 = smov 8   ;;  %s1891_s13 = sand.u32 1, %s1580_s22  }
  0x56   : > { %1195 = dma.hbm_to_vmem [thread:$0]  (!%p1830_p1), %s240_s27, 256, %s1835_s14, %s230_s10, %s2145_s17, %s2146_s8, %s1626_s20  }
  0x57   : > { %s1052_s12 = sshll.u32 %s1844_s4, 7  ;;  %s1050_s18 = sshll.u32 %s1891_s13, 3 }
  0x58   : > { %s282_s26 = scalar_lea.hbm %s2128_s2, %s1052_s12  ;;  %s275_s15 = scalar_lea.vmem [#allocation11], %s1050_s18 }
  0x59   : > { %s284_s0 = sshll.u32 %s275_s15, 4  ;;  %s1053_s1 = sshll.u32 %s1891_s13, 4  ;;  %s285_s0 = int_to_ptr.vmem [resolvable:$true] %s284_s0 }
  0x5a   : > { %p1418_p5 = pneg %p1860_p10  ;;  %s1429_s9 = scalar_lea.vmem %s285_s0, 128 }
  0x5b   : > { %p1430_p3 = scmp.ne.s32.totalorder %s285_s0, %s1429_s9  ;;  %s1627_s14 = smov [#allocation11]  }
  0x5c   : > { %s1434_s27 = sshll.u32 %s1627_s14, 4  ;;  %s1435_s27 = int_to_ptr.vmem [resolvable:$false] %s1434_s27 }
  0x5d   : > { %p1432_p1 = pnand %p1430_p3, %p1418_p5  ;;  %s1436_s4 = scalar_lea.vmem %s1435_s27, 256 }
  0x5e   : > { %p1437_p4 = scmp.lt.s32.totalorder %s285_s0, %s1435_s27  ;;  %p1438_p8 = scmp.lt.s32.totalorder %s1436_s4, %s1429_s9 }
  0x5f   : > { %p1433_p11 = pneg %p1432_p1 }
  0x60   : > { %p1439_p6 = por %p1438_p8, %p1437_p4 }
  0x62   : > { %p1440_p9 = pnand %p1439_p6, %p1433_p11 }
  0x64   : > { %1443 = shalt.err (!%p1440_p9)
}
  0x65   : > { %1201 = dma.hbm_to_vmem [thread:$0]  (!%p1860_p10), %s282_s26, 128, %s285_s0, %s1846_s19  }
  0x66   : > { %s295_s15 = scalar_lea.vmem [#allocation12], %s1053_s1  ;;  %s2177_s12 = sshll.u32 %s1616_s30, 2 }
  0x67   : > { %s303_s10 = sshll.u32 %s295_s15, 4  ;;  %s300_s18 = sadd.s32 %s1608_s28, %s2177_s12  ;;  %s304_s10 = int_to_ptr.vmem [resolvable:$true] %s303_s10 }
  0x68   : > { %s1055_s5 = sshll.u32 %s300_s18, 7  ;;  %s292_s27 = scalar_lea.sflag [#allocation13], %s1891_s13 }
  0x69   : > { %s302_s9 = scalar_lea.hbm %s2129_s3, %s1055_s5  ;;  %s1457_s4 = scalar_lea.vmem %s304_s10, 256 }
  0x6a   : > { %p1458_p13 = scmp.ne.s32.totalorder %s304_s10, %s1457_s4  ;;  %s1628_s17 = smov [#allocation12]  }
  0x6b   : > { %s1462_s8 = sshll.u32 %s1628_s17, 4  ;;  %s1463_s8 = int_to_ptr.vmem [resolvable:$false] %s1462_s8 }
  0x6c   : > { %p1460_p3 = pnand %p1458_p13, %p1418_p5  ;;  %s1464_s0 = scalar_lea.vmem %s1463_s8, 512 }
  0x6d   : > { %p1465_p11 = scmp.lt.s32.totalorder %s304_s10, %s1463_s8  ;;  %p1466_p4 = scmp.lt.s32.totalorder %s1464_s0, %s1457_s4 }
  0x6e   : > { %p1461_p1 = pneg %p1460_p3 }
  0x6f   : > { %p1467_p8 = por %p1466_p4, %p1465_p11 }
  0x71   : > { %p1468_p6 = pnand %p1467_p8, %p1461_p1 }
  0x73   : > { %1471 = shalt.err (!%p1468_p6)
}
  0x74   : > { %s2178_s1 = smov 128   ;;  %s2179_s19 = smov 256  }
  0x75   : > { %1204 = dma.hbm_to_vmem [thread:$0]  (!%p1860_p10), %s302_s9, 256, %s304_s10, %s292_s27, %s2179_s19, %s2178_s1, %s1626_s20  }
  0x76   : > { %315 = sbr.rel (%p1866_p0) target bundleno = 891 (0x37b), region = 40  ;;  %s1925_s13 = sand.u32 (!%p1866_p0), 1, %s1588_s24  }
  0x77   : > { %s1057_s17 = sshll.u32 (!%p1866_p0), %s1925_s13, 4  ;;  %s318_s8 = scalar_lea.sflag (!%p1866_p0), [#allocation7], %s1925_s13 }
  0x78   : > { %s1929_s26 = scalar_lea.vmem (!%p1866_p0), [#allocation6], %s1057_s17 }
  0x7b   : > { %1551 = dma.done.wait (%p1771_p7), %s318_s8, 256  }
  0x7c   : > { %1553 = vsyncadd (%p1771_p7), %s318_s8, 4294967040  ;;  %s326_s23 = sand.u32 1, %s1734_s7   ;;  %s1058_s11 = sshll.u32 %s1925_s13, 3 }
  0x7d   : > { %s327_s20 = scalar_lea.sflag [#allocation10], %s326_s23  ;;  %s330_s15 = scalar_lea.vmem [#allocation9], %s1058_s11 }
  0x7e   : > { %1555 = dma.done.wait (%p1771_p7), %s327_s20, 128  }
  0x7f   : > { %1557 = vsyncadd (%p1771_p7), %s327_s20, 4294967168  ;;  %s337_s12 = sand.u32 1, %s1576_s21  }
  0x80   : > { %s1059_s18 = sshll.u32 %s337_s12, 3 }
  0x81   : > { %s339_s5 = scalar_lea.vmem [#allocation11], %s1059_s18 }
  0x82   : > { %1559 = dma.done.wait (%p1790_p12), %s327_s20, 128  }
  0x83   : > { %1561 = vsyncadd (%p1790_p12), %s327_s20, 4294967168  ;;  %s1060_s7 = sshll.u32 %s337_s12, 4  ;;  %s345_s25 = scalar_lea.sflag [#allocation13], %s337_s12 }
  0x84   : > { %s348_s14 = scalar_lea.vmem [#allocation12], %s1060_s7 }
  0x85   : > { %1563 = dma.done.wait (%p1790_p12), %s345_s25, 256  }
  0x86   : > { %1565 = vsyncadd (%p1790_p12), %s345_s25, 4294967040  ;;  %s1950_s16 = scalar_lea.vmem [#allocation14], %s1057_s17  ;;  %s2181_s9 = sld [smem:[#allocation22_spill]] }
  0x8c   : > { %p1062_p7 = scmp.ne.s32.totalorder %s2181_s9, 0 }
  0x8e   : > { %393 = sbr.rel (%p1062_p7) target bundleno = 150 (0x96), region = 60 }
  0x93   : > { %v1629_v0 = vmov -inf   ;;  %v1630_v1 = vmov 0.0  }
  0x94   : > { %394 = vst [vmem:[#allocation2] sm:$0x1] %v1629_v0  ;;  %395 = vst [vmem:[#allocation3] sm:$0x1] %v1630_v1 }
  0x95   : > { %396 = vst [vmem:[#allocation4] sm:$0xff] %v1630_v1  ;;  %397 = vst [vmem:[#allocation4 + $0x8] sm:$0xff] %v1630_v1 }
  0x96 PF: > { %v399_v2 = vld [vmem:[%s339_s5] sm:$0xff]  ;;  %v398_v3 = vld [vmem:[%s330_s15] sm:$0xff]  ;;  %vm434_vm0 = vcmask 64512   ;;  %v652_v55 = vlaneseq  ;;  %s2182_s27 = sld [smem:[#allocation22_spill]] }
  0x97   : > { %v1953_v4 = vld [vmem:[%s348_s14] sm:$0xff]  ;;  %402 = vxpose.xlu0.b32.start.end [1/1] (short) %v399_v2, 128  ;;  %v1955_v5 = vld [vmem:[%s348_s14 + $0x8] sm:$0xff]  ;;  %1121 = vmatprep.subr.mxu0 %v398_v3 }
  0x98   : > { %1122 = vmatpush3.msra.mxu0 %v398_v3  ;;  %v653_v58 = vshrl.u32 %v652_v55, 7 }
  0x9a   : > { %v1993_v62 = vsub.s32 0, %v653_v58 }
  0x9b   : > { %v1991_v60 = vld [vmem:[#allocation2] sm:$0x1] }
  0x9c   : > { %p1079_p12 = scmp.le.s32.totalorder %s2182_s27, 0 }
 0x113   : > { %v418_v6 = vpop.trf.xlu0 }
 0x114   : > { %1123 = vmatprep.mubr.msk.f32.mxu0 %vm434_vm0, %v418_v6 }
 0x117   : > { %v419_v7 = vpop.trf.xlu0 }
 0x118   : > { %1124 = vmatmul.mubr.msk.f32.vlgmr.msra.gmra.mxu0 %vm434_vm0, %v419_v7 }
 0x11b   : > { %v420_v8 = vpop.trf.xlu0 }
 0x11c   : > { %1126 = vmatprep.mubr.msk.f32.mxu0 %vm434_vm0, %v420_v8 }
 0x11f   : > { %v421_v9 = vpop.trf.xlu0 }
 0x120   : > { %1127 = vmatmul.mubr.msk.f32.gmra.mxu0 %vm434_vm0, %v421_v9 }
 0x123   : > { %v422_v10 = vpop.trf.xlu0 }
 0x124   : > { %1129 = vmatprep.mubr.msk.f32.mxu0 %vm434_vm0, %v422_v10 }
 0x127   : > { %v423_v11 = vpop.trf.xlu0 }
 0x128   : > { %1130 = vmatmul.mubr.msk.f32.gmra.mxu0 %vm434_vm0, %v423_v11 }
 0x12b   : > { %v424_v12 = vpop.trf.xlu0 }
 0x12c   : > { %1132 = vmatprep.mubr.msk.f32.mxu0 %vm434_vm0, %v424_v12 }
 0x12f   : > { %v425_v13 = vpop.trf.xlu0 }
 0x130   : > { %1133 = vmatmul.mubr.msk.f32.gmra.mxu0 %vm434_vm0, %v425_v13 }
 0x133   : > { %v426_v14 = vpop.trf.xlu0 }
 0x134   : > { %1135 = vmatprep.mubr.msk.f32.mxu0 %vm434_vm0, %v426_v14 }
 0x137   : > { %v427_v15 = vpop.trf.xlu0 }
 0x138   : > { %1136 = vmatmul.mubr.msk.f32.gmra.mxu0 %vm434_vm0, %v427_v15 }
 0x13b   : > { %v428_v16 = vpop.trf.xlu0 }
 0x13c   : > { %1138 = vmatprep.mubr.msk.f32.mxu0 %vm434_vm0, %v428_v16 }
 0x13f   : > { %v429_v17 = vpop.trf.xlu0 }
 0x140   : > { %1139 = vmatmul.mubr.msk.f32.gmra.mxu0 %vm434_vm0, %v429_v17 }
 0x143   : > { %v430_v18 = vpop.trf.xlu0 }
 0x144   : > { %1141 = vmatprep.mubr.msk.f32.mxu0 %vm434_vm0, %v430_v18 }
 0x147   : > { %v431_v19 = vpop.trf.xlu0 }
 0x148   : > { %1142 = vmatmul.mubr.msk.f32.gmra.mxu0 %vm434_vm0, %v431_v19 }
 0x14b   : > { %v432_v20 = vpop.trf.xlu0 }
 0x14c   : > { %1144 = vmatprep.mubr.msk.f32.mxu0 %vm434_vm0, %v432_v20 }
 0x14f   : > { %v433_v21 = vpop.trf.xlu0 }
 0x150   : > { %1145 = vmatmul.mubr.msk.f32.gmra.mxu0 %vm434_vm0, %v433_v21 }
 0x1d8   : > { %v1125_v22 = vpop.f32.mrf.mxu0 }
 0x1da   : > { %v549_v23 = vpop.f32.mrf.mxu0 }
 0x1e0   : > { %v1128_v24 = vpop.f32.mrf.mxu0 }
 0x1e2   : > { %v559_v25 = vpop.f32.mrf.mxu0 }
 0x1e8   : > { %v1131_v26 = vpop.f32.mrf.mxu0 }
 0x1e9   : > { %v630_v37 = vmax.f32 %v1125_v22, %v1131_v26 }
 0x1ea   : > { %v569_v27 = vpop.f32.mrf.mxu0 }
 0x1eb   : > { %v629_v35 = vmax.f32 %v549_v23, %v569_v27 }
 0x1f0   : > { %v1134_v28 = vpop.f32.mrf.mxu0 }
 0x1f1   : > { %v632_v38 = vmax.f32 %v1128_v24, %v1134_v28 }
 0x1f2   : > { %v579_v29 = vpop.f32.mrf.mxu0 }
 0x1f3   : > { %v631_v39 = vmax.f32 %v559_v25, %v579_v29 }
 0x1f8   : > { %v1973_v30 = vpop.f32.mrf.mxu0 }
 0x1f9   : > { %v634_v42 = vmax.f32 %v630_v37, %v1973_v30 }
 0x1fa   : > { %v589_v31 = vpop.f32.mrf.mxu0 }
 0x1fb   : > { %v633_v40 = vmax.f32 %v629_v35, %v589_v31 }
 0x200   : > { %v1975_v32 = vpop.f32.mrf.mxu0 }
 0x201   : > { %v636_v43 = vmax.f32 %v632_v38, %v1975_v32 }
 0x202   : > { %v1977_v33 = vpop.f32.mrf.mxu0 }
 0x203   : > { %v635_v44 = vmax.f32 %v631_v39, %v1977_v33 }
 0x208   : > { %v1979_v34 = vpop.f32.mrf.mxu0 }
 0x209   : > { %v638_v47 = vmax.f32 %v634_v42, %v1979_v34 }
 0x20a   : > { %v1981_v36 = vpop.f32.mrf.mxu0 }
 0x20b   : > { %v637_v45 = vmax.f32 %v633_v40, %v1981_v36 }
 0x20d   : > { %v641_v50 = vmax.f32 %v637_v45, %v638_v47 }
 0x210   : > { %v1983_v41 = vpop.f32.mrf.mxu0 }
 0x211   : > { %v640_v48 = vmax.f32 %v636_v43, %v1983_v41 }
 0x212   : > { %v619_v46 = vpop.f32.mrf.mxu0 }
 0x213   : > { %v639_v49 = vmax.f32 %v635_v44, %v619_v46 }
 0x215   : > { %v642_v51 = vmax.f32 %v639_v49, %v640_v48 }
 0x217   : > { %v643_v52 = vmax.f32 %v641_v50, %v642_v51 }
 0x219   : > { %v644_v53 = vrot.slane %v643_v52, 4 }
 0x21b   : > { %v645_v54 = vmax.f32 %v643_v52, %v644_v53 }
 0x21d   : > { %v646_v56 = vrot.slane %v645_v54, 2 }
 0x21f   : > { %v647_v57 = vmax.f32 %v645_v54, %v646_v56 }
 0x221   : > { %v648_v59 = vrot.slane %v647_v57, 1 }
 0x223   : > { %v649_v61 = vmax.f32 %v647_v57, %v648_v59 }
 0x225   : > { %v1996_v63 = vmax.f32 %v1991_v60, %v649_v61 }
 0x227   : > { %v655_v0 = vrot.slane %v1996_v63, %v1993_v62  ;;  %705 = vst [vmem:[#allocation2] sm:$0x1] %v1996_v63 }
 0x229   : > { %v657_v1 = vsub.f32 %v549_v23, %v655_v0  ;;  %v658_v2 = vsub.f32 %v1125_v22, %v655_v0  ;;  %v659_v3 = vsub.f32 %v559_v25, %v655_v0  ;;  %v660_v6 = vsub.f32 %v1128_v24, %v655_v0 }
 0x22a   : > { %v661_v7 = vsub.f32 %v569_v27, %v655_v0  ;;  %v662_v8 = vsub.f32 %v1131_v26, %v655_v0  ;;  %v663_v9 = vsub.f32 %v579_v29, %v655_v0  ;;  %v664_v13 = vsub.f32 %v1134_v28, %v655_v0 }
 0x22b   : > { %v673_v10 = vmul.f32 1.442695, %v657_v1  ;;  %v675_v11 = vmul.f32 1.442695, %v658_v2  ;;  %v677_v12 = vmul.f32 1.442695, %v659_v3  ;;  %v665_v15 = vsub.f32 %v589_v31, %v655_v0 }
 0x22c   : > { %v679_v14 = vmul.f32 1.442695, %v660_v6  ;;  %v681_v16 = vmul.f32 1.442695, %v661_v7  ;;  %v666_v17 = vsub.f32 %v1973_v30, %v655_v0  ;;  %v683_v18 = vmul.f32 1.442695, %v662_v8 }
 0x22d   : > { %1324 = vpow2.f32 %v673_v10  ;;  %v667_v19 = vsub.f32 %v1977_v33, %v655_v0  ;;  %v685_v20 = vmul.f32 1.442695, %v663_v9  ;;  %v668_v21 = vsub.f32 %v1975_v32, %v655_v0 }
 0x22e   : > { %1326 = vpow2.f32 %v675_v11  ;;  %v687_v22 = vmul.f32 1.442695, %v664_v13  ;;  %v669_v23 = vsub.f32 %v1981_v36, %v655_v0  ;;  %v689_v24 = vmul.f32 1.442695, %v665_v15 }
 0x22f   : > { %1328 = vpow2.f32 %v677_v12  ;;  %v670_v25 = vsub.f32 %v1979_v34, %v655_v0  ;;  %v691_v26 = vmul.f32 1.442695, %v666_v17  ;;  %v671_v27 = vsub.f32 %v619_v46, %v655_v0 }
 0x230   : > { %1330 = vpow2.f32 %v679_v14  ;;  %v693_v28 = vmul.f32 1.442695, %v667_v19  ;;  %v672_v29 = vsub.f32 %v1983_v41, %v655_v0  ;;  %v695_v30 = vmul.f32 1.442695, %v668_v21 }
 0x231   : > { %1332 = vpow2.f32 %v681_v16  ;;  %v697_v31 = vmul.f32 1.442695, %v669_v23  ;;  %v699_v32 = vmul.f32 1.442695, %v670_v25  ;;  %v701_v33 = vmul.f32 1.442695, %v671_v27 }
 0x232   : > { %1334 = vpow2.f32 %v683_v18  ;;  %v703_v35 = vmul.f32 1.442695, %v672_v29 }
 0x233   : > { %1336 = vpow2.f32 %v685_v20 }
 0x234   : > { %1338 = vpow2.f32 %v687_v22 }
 0x235   : > { %1340 = vpow2.f32 %v689_v24 }
 0x236   : > { %1342 = vpow2.f32 %v691_v26 }
 0x237   : > { %1344 = vpow2.f32 %v693_v28 }
 0x238   : > { %1346 = vpow2.f32 %v695_v30 }
 0x239   : > { %1348 = vpow2.f32 %v697_v31 }
 0x23a   : > { %v2007_v36 = vpop.eup %1324  ;;  %1350 = vpow2.f32 %v699_v32 }
 0x23b   : > { %v2009_v34 = vpop.eup %1326  ;;  %1352 = vpow2.f32 %v701_v33 }
 0x23c   : > { %v2011_v37 = vpop.eup %1328  ;;  %1354 = vpow2.f32 %v703_v35 }
 0x23d   : > { %v2013_v38 = vpop.eup %1330 }
 0x23e   : > { %v2015_v39 = vpop.eup %1332 }
 0x23f   : > { %v1335_v40 = vpop.eup %1334 }
 0x240   : > { %v1337_v41 = vpop.eup %1336 }
 0x241   : > { %v1339_v42 = vpop.eup %1338 }
 0x242   : > { %v1341_v43 = vpop.eup %1340 }
 0x243   : > { %v1343_v44 = vpop.eup %1342 }
 0x244   : > { %v1345_v45 = vpop.eup %1344 }
 0x245   : > { %v1347_v46 = vpop.eup %1346  ;;  %709 = sbr.rel (%p1079_p12) target bundleno = 609 (0x261), region = 64 }
 0x246   : > { %v1349_v47 = vpop.eup %1348 }
 0x247   : > { %v1351_v48 = vpop.eup %1350 }
 0x248   : > { %v1353_v49 = vpop.eup %1352 }
 0x249   : > { %v1355_v50 = vpop.eup %1354 }
 0x24a   : > { %v710_v51 = vsub.f32 %v1991_v60, %v1996_v63  ;;  %v725_v53 = vld [vmem:[#allocation3] sm:$0x1]  ;;  %v713_v55 = vld [vmem:[#allocation4] sm:$0xff]  ;;  %v714_v56 = vld [vmem:[#allocation4 + $0x8] sm:$0xff] }
 0x24c   : > { %v711_v52 = vmul.f32 1.442695, %v710_v51 }
 0x24e   : > { %1356 = vpow2.f32 %v711_v52 }
 0x25b   : > { %v1357_v54 = vpop.eup %1356 }
 0x25c   : > { %v719_v57 = vrot.slane %v1357_v54, %v1993_v62  ;;  %v726_v58 = vmul.f32 %v1357_v54, %v725_v53 }
 0x25e   : > { %v721_v59 = vmul.f32 %v719_v57, %v713_v55  ;;  %v722_v61 = vmul.f32 %v719_v57, %v714_v56  ;;  %727 = vst [vmem:[#allocation3] sm:$0x1] %v726_v58 }
 0x260   : > { %723 = vst [vmem:[#allocation4] sm:$0xff] %v721_v59  ;;  %724 = vst [vmem:[#allocation4 + $0x8] sm:$0xff] %v722_v61 }
 0x261 PF: > { %v729_v0 = vadd.f32 %v2009_v34, %v2007_v36  ;;  %1147 = vmatprep.subr.mxu1 %v1355_v50  ;;  %1179 = vmatprep.mubr.f32.mxu1 %v1953_v4  ;;  %s2183_s4 = sld [smem:[#allocation22_spill]] }
 0x262   : > { %1148 = vmatpush3.msra.mxu1 %v1355_v50 }
 0x263   : > { %v730_v60 = vadd.f32 %v2011_v37, %v729_v0  ;;  %1149 = vmatprep.subr.mxu1 %v1353_v49 }
 0x264   : > { %1150 = vmatpush3.msra.mxu1 %v1353_v49 }
 0x265   : > { %v731_v63 = vadd.f32 %v2013_v38, %v730_v60  ;;  %1151 = vmatprep.subr.mxu1 %v1351_v48  ;;  %v728_v19 = vld [vmem:[#allocation3] sm:$0x1] }
 0x266   : > { %1152 = vmatpush3.msra.mxu1 %v1351_v48 }
 0x267   : > { %v732_v1 = vadd.f32 %v2015_v39, %v731_v63  ;;  %1153 = vmatprep.subr.mxu1 %v1349_v47  ;;  %v753_v22 = vld [vmem:[#allocation4 + $0x8] sm:$0xff]  ;;  %v752_v24 = vld [vmem:[#allocation4] sm:$0xff]  ;;  %p1080_p10 = scmp.ne.s32.totalorder %s2183_s4, 1 }
 0x268   : > { %1154 = vmatpush3.msra.mxu1 %v1349_v47  ;;  %s839_s0 = sld [smem:[#allocation5]] (!%p1080_p10) }
 0x269   : > { %v733_v2 = vadd.f32 %v1335_v40, %v732_v1  ;;  %1155 = vmatprep.subr.mxu1 %v1347_v46 }
 0x26a   : > { %1156 = vmatpush3.msra.mxu1 %v1347_v46 }
 0x26b   : > { %v734_v3 = vadd.f32 %v1337_v41, %v733_v2  ;;  %1157 = vmatprep.subr.mxu1 %v1345_v45 }
 0x26c   : > { %1158 = vmatpush3.msra.mxu1 %v1345_v45 }
 0x26d   : > { %v735_v4 = vadd.f32 %v1339_v42, %v734_v3  ;;  %1159 = vmatprep.subr.mxu1 %v1343_v44 }
 0x26e   : > { %1160 = vmatpush3.msra.mxu1 %v1343_v44 }
 0x26f   : > { %v736_v6 = vadd.f32 %v1341_v43, %v735_v4  ;;  %1161 = vmatprep.subr.mxu1 %v1341_v43 }
 0x270   : > { %1162 = vmatpush3.msra.mxu1 %v1341_v43 }
 0x271   : > { %v737_v7 = vadd.f32 %v1343_v44, %v736_v6  ;;  %1163 = vmatprep.subr.mxu1 %v1339_v42 }
 0x272   : > { %1164 = vmatpush3.msra.mxu1 %v1339_v42 }
 0x273   : > { %v738_v8 = vadd.f32 %v1345_v45, %v737_v7  ;;  %1165 = vmatprep.subr.mxu1 %v1337_v41 }
 0x274   : > { %1166 = vmatpush3.msra.mxu1 %v1337_v41 }
 0x275   : > { %v739_v9 = vadd.f32 %v1347_v46, %v738_v8  ;;  %1167 = vmatprep.subr.mxu1 %v1335_v40 }
 0x276   : > { %1168 = vmatpush3.msra.mxu1 %v1335_v40 }
 0x277   : > { %v740_v10 = vadd.f32 %v1349_v47, %v739_v9  ;;  %1169 = vmatprep.subr.mxu1 %v2015_v39 }
 0x278   : > { %1170 = vmatpush3.msra.mxu1 %v2015_v39 }
 0x279   : > { %v741_v11 = vadd.f32 %v1351_v48, %v740_v10  ;;  %1171 = vmatprep.subr.mxu1 %v2013_v38 }
 0x27a   : > { %1172 = vmatpush3.msra.mxu1 %v2013_v38 }
 0x27b   : > { %v742_v12 = vadd.f32 %v1353_v49, %v741_v11  ;;  %1173 = vmatprep.subr.mxu1 %v2011_v37 }
 0x27c   : > { %1174 = vmatpush3.msra.mxu1 %v2011_v37 }
 0x27d   : > { %v743_v13 = vadd.f32 %v1355_v50, %v742_v12  ;;  %1175 = vmatprep.subr.mxu1 %v2009_v34 }
 0x27e   : > { %1176 = vmatpush3.msra.mxu1 %v2009_v34 }
 0x27f   : > { %v744_v14 = vrot.slane %v743_v13, 4  ;;  %1177 = vmatprep.subr.mxu1 %v2007_v36 }
 0x280   : > { %1178 = vmatpush3.msra.mxu1 %v2007_v36 }
 0x281   : > { %v745_v15 = vadd.f32 %v744_v14, %v743_v13  ;;  %1180 = vmatmul.mubr.f32.vlgmr.msra.gmra.mxu1 %v1955_v5 }
 0x283   : > { %v746_v16 = vrot.slane %v745_v15, 2 }
 0x285   : > { %v747_v17 = vadd.f32 %v746_v16, %v745_v15 }
 0x287   : > { %v748_v18 = vrot.slane %v747_v17, 1 }
 0x289   : > { %v749_v20 = vadd.f32 %v748_v18, %v747_v17 }
 0x28b   : > { %v750_v21 = vadd.f32 %v749_v20, %v728_v19 }
 0x28d   : > { %751 = vst [vmem:[#allocation3] sm:$0x1] %v750_v21 }
 0x341   : > { %v1181_v23 = vpop.f32.mrf.mxu1 }
 0x342   : > { %v830_v25 = vadd.f32 %v1181_v23, %v753_v22  ;;  %836 = sbr.rel (%p1080_p10) target bundleno = 863 (0x35f), region = 68 }
 0x343   : > { %v820_v26 = vpop.f32.mrf.mxu1 }
 0x344   : > { %832 = vst [vmem:[#allocation4 + $0x8] sm:$0xff] %v830_v25  ;;  %v829_v27 = vadd.f32 %v820_v26, %v752_v24 }
 0x346   : > { %831 = vst [vmem:[#allocation4] sm:$0xff] %v829_v27 }
 0x347   : > { %v837_v28 = vld [vmem:[#allocation3] sm:$0x1]  ;;  %v850_v32 = vstv %s839_s0  ;;  %v853_v36 = vld [vmem:[%s1929_s26] sm:$0xff] }
 0x348   : > { %1358 = vrcp.f32 %v837_v28  ;;  %v854_v34 = vld [vmem:[%s1929_s26 + $0x8] sm:$0xff] }
 0x34b   : > { %v841_v30 = vld [vmem:[#allocation4 + $0x8] sm:$0xff] }
 0x34d   : > { %v840_v29 = vld [vmem:[#allocation4] sm:$0xff] }
 0x355   : > { %v1359_v5 = vpop.eup %1358 }
 0x356   : > { %v846_v31 = vrot.slane %v1359_v5, %v1993_v62 }
 0x358   : > { %v848_v33 = vmul.f32 %v846_v31, %v840_v29  ;;  %v849_v35 = vmul.f32 %v846_v31, %v841_v30 }
 0x35a   : > { %v851_v37 = vmul.f32 %v850_v32, %v848_v33  ;;  %v852_v38 = vmul.f32 %v850_v32, %v849_v35 }
 0x35c   : > { %v855_v39 = vadd.f32 %v853_v36, %v851_v37  ;;  %v856_v40 = vadd.f32 %v854_v34, %v852_v38 }
 0x35e   : > { %857 = vst [vmem:[%s1950_s16] sm:$0xff] %v855_v39  ;;  %858 = vst [vmem:[%s1950_s16 + $0x8] sm:$0xff] %v856_v40 }
 0x35f PF: > { %s2184_s1 = sld [smem:[#allocation24_spill]]  ;;  %s874_s11 = sshll.u32 %s1950_s16, 4  ;;  %s2047_s11 = int_to_ptr.vmem [resolvable:$true] %s874_s11 }
 0x360   : > { %s2185_s19 = sld [smem:[#allocation23_spill]]  ;;  %s860_s18 = scalar_lea.sflag [#allocation8], %s1925_s13 }
 0x361   : > { %s2187_s10 = sld [smem:[#allocation35_spill]]  ;;  %s1472_s5 = scalar_lea.vmem %s2047_s11, 256 }
 0x362   : > { %p1473_p0 = scmp.ne.s32.totalorder %s2047_s11, %s1472_s5  ;;  %s1631_s7 = smov [#allocation14]  }
 0x363   : > { %s1476_s25 = sshll.u32 %s1631_s7, 4  ;;  %s1477_s25 = int_to_ptr.vmem [resolvable:$false] %s1476_s25 }
 0x364   : > { %p1474_p5 = pnand %p1473_p0, %p1800_p2  ;;  %s1478_s14 = scalar_lea.vmem %s1477_s25, 512 }
 0x365   : > { %s1082_s8 = sshll.u32 %s2184_s1, 2  ;;  %p1479_p13 = scmp.lt.s32.totalorder %s2047_s11, %s1477_s25 }
 0x366   : > { %s871_s23 = sadd.s32 %s2185_s19, %s1082_s8  ;;  %p1475_p9 = pneg %p1474_p5 }
 0x367   : > { %s1083_s20 = sshll.u32 %s871_s23, 7  ;;  %p1480_p3 = scmp.lt.s32.totalorder %s1478_s14, %s1472_s5 }
 0x368   : > { %s2052_s12 = scalar_lea.hbm %s2187_s10, %s1083_s20 }
 0x369   : > { %p1481_p1 = por %p1480_p3, %p1479_p13 }
 0x36b   : > { %p1482_p11 = pnand %p1481_p1, %p1475_p9 }
 0x36d   : > { %1485 = shalt.err (!%p1482_p11)
}
 0x36e   : > { %s1486_s16 = scalar_lea.hbm %s2052_s12, 256  ;;  %s1490_s4 = scalar_lea.hbm %s2187_s10, 1024 }
 0x36f   : > { %p1487_p4 = scmp.ne.s32.totalorder %s2052_s12, %s1486_s16  ;;  %p1491_p7 = scmp.lt.s32.totalorder %s2052_s12, %s2187_s10 }
 0x370   : > { %p1492_p12 = scmp.lt.s32.totalorder %s1490_s4, %s1486_s16 }
 0x371   : > { %p1488_p8 = pnand %p1487_p4, %p1800_p2 }
 0x372   : > { %p1493_p10 = por %p1492_p12, %p1491_p7 }
 0x373   : > { %p1489_p6 = pneg %p1488_p8 }
 0x375   : > { %p1494_p0 = pnand %p1493_p10, %p1489_p6 }
 0x377   : > { %1497 = shalt.err (!%p1494_p0)
}
 0x378   : > { %s1632_s19 = smov 128   ;;  %s1633_s8 = smov 256  }
 0x379   : > { %s1634_s23 = smov 8  }
 0x37a   : > { %1190 = dma.vmem_to_hbm [thread:$0]  (%p1800_p2), %s2047_s11, 256, %s2052_s12, %s860_s18, %s1632_s19, %s1633_s8, %s1634_s23  }
 0x37b PF: > { %s2188_s20 = sld [smem:[#allocation20_spill]]  ;;  %p1210_p5 = scmp.ge.s32.totalorder %s1620_s6, 2 }
 0x37c   : > { %s2189_s15 = sld [smem:[#allocation32_spill]] }
 0x381   : > { %s889_s26 = sand.u32 1, %s2188_s20  }
 0x382   : > { %p2190_p9 = scmp.ne.s32.totalorder %s2189_s15, 0  ;;  %s890_s5 = scalar_lea.sflag [#allocation8], %s889_s26 }
 0x384   : > { %p1206_p13 = pnand %p1210_p5, %p2190_p9 }
 0x386   : > { %p1207_p3 = pneg %p1206_p13 }
 0x388   : > { %1567 = dma.done.wait (%p1207_p3), %s890_s5, 256  }
 0x389   : > { %1569 = vsyncadd (%p1207_p3), %s890_s5, 4294967040  ;;  %s28_s6 = sadd.s32 1, %s1620_s6   ;;  %s2192_s13 = sld [smem:[#allocation31_spill]] }
 0x38a   : > { %p2082_p1 = scmp.ge.s32.totalorder %s28_s6, 10   ;;  %s2193_s17 = sld [smem:[#allocation21_spill]] }
 0x38b   : > { %s2194_s25 = sld [smem:[#allocation30_spill]]  ;;  %s2198_s20 = smov %s1576_s21 }
 0x38c   : > { %s2195_s11 = sld [smem:[#allocation25_spill]]  ;;  %s2199_s21 = smov %s1580_s22 }
 0x38d   : > { %s2196_s12 = sld [smem:[#allocation26_spill]]  ;;  %s2201_s23 = smov %s1588_s24 }
 0x38e   : > { %s2197_s18 = sld [smem:[#allocation27_spill]]  ;;  %s2203_s4 = smov %s1608_s28 }
 0x38f   : > { %s2200_s22 = smov %s2192_s13  ;;  %s2204_s26 = smov %s1612_s29 }
 0x390   : > { %s2202_s24 = smov %s2193_s17  ;;  %s2205_s27 = smov %s1616_s30 }
 0x391   :  { %27 = sbr.rel (!%p2082_p1) target bundleno = 19 (0x13), region = 134 }
 0x392   : > { %s2206_s28 = smov %s2195_s11 }
 0x393   : > { %s2207_s29 = smov %s2196_s12 }
 0x394   : > { %s2208_s30 = smov %s2197_s18 }
 0x396   :  { %895 = vsyncpa [#allocation7], 1 }
 0x397   :  { %897 = vsyncpa [#allocation7 + $0x1], 1 }
 0x398   :  { %898 = vsyncpa [#allocation10], 1 }
 0x399   :  { %900 = vsyncpa [#allocation10 + $0x1], 1 }
 0x39a   :  { %901 = vsyncpa [#allocation13], 1 }
 0x39b   :  { %903 = vsyncpa [#allocation13 + $0x1], 1 }
 0x39c   :  { %904 = vsyncpa [#allocation8], 1 }
 0x39d   :  { %906 = vsyncpa [#allocation8 + $0x1], 1 }

</bundles_post_ra>
